<compile_context>
chip_gen: v7x
topology: tpu7x:2x2x1
jax: 0.10.0
libtpu: 0.0.40
codegen_flags: <defaults>
</compile_context>

<pallas_src>
import functools
import math

import jax
import jax.numpy as jnp
from jax import lax
from jax.experimental import pallas as pl
from jax.experimental.pallas import tpu as pltpu


def _conv_kernel(x_ref, w_ref, b_ref, o_ref, *, K, S, Cin, Wsq, tlen):
    """One (batch, H-tile) step of the fused upsample+pad+conv.

    x_ref : (1, 1, S*Cin, Lin)   flattened padded/upsampled tile; lane index = R*Wsq + u
                                 (padded row R, column-quotient u) per stride-residue plane.
    w_ref : (K*K, Cout, Cin)     per-tap weight matrices.
    b_ref : (Cout, 1)            bias column (f32).
    o_ref : (1, Cout, th*Wrow)   flat lane-dense output tile (output row stride Wrow=S*Wsq).
    """
    acc = None
    for ky in range(K):                       # K*K static taps (independent of tile height)
        for kx in range(K):
            q, d = kx % S, kx // S
            off = ky * Wsq + d                # every output lane uses the SAME tap offset
            rhs = x_ref[0, 0, q * Cin:(q + 1) * Cin, off:off + tlen]     # (Cin, th*Wrow)
            p = jnp.dot(w_ref[ky * K + kx], rhs, preferred_element_type=jnp.float32)
            acc = p if acc is None else acc + p
    o_ref[0] = (acc + b_ref[...]).astype(o_ref.dtype)    # bias: one broadcast VPU add


def upsample_conv_layer(x_nchw, weight, bias, *, kernel_size, stride, upsample=None,
                        operand_dtype=None, vmem_budget_bytes=12 * 1024 * 1024):
    """Forward pass matching the PyTorch UpsampleConvLayer.

    x_nchw : (N, Cin, H, W) float32
    weight : (Cout, Cin, K, K)   (PyTorch Conv2d weight layout)
    bias   : (Cout,)
    operand_dtype : pass jnp.bfloat16 on v6e/v7x to halve HBM traffic (f32 accumulation).
    """
    N, Cin, H, W = x_nchw.shape
    Cout = weight.shape[0]
    K, S = kernel_size, stride
    pad = K // 2
    U = int(upsample) if upsample else 1
    Hu, Wu = H * U, W * U
    # Single-reflection index math below requires pad < upsampled extent (same requirement
    # as nn.ReflectionPad2d itself).
    assert pad < Hu and pad < Wu, "reflection padding must be smaller than the (upsampled) input"
    Hp, Wp = Hu + 2 * pad, Wu + 2 * pad
    HO = (Hp - K) // S + 1
    WO = (Wp - K) // S + 1

    # ---- tile geometry ------------------------------------------------------------------
    # Flat layout: padded-upsampled row R, column-quotient u (padded col = u*S + q) lives at
    # lane R*Wsq + u of residue plane q.  Output (h, wo) lives at lane h*Wrow + wo
    # (Wrow = S*Wsq), and tap (ky, kx) is the constant lane offset ky*Wsq + kx//S on plane
    # kx%S -- so all taps are plain lane-window slices.
    def geom(t):
        wsq_min = WO + (K - 1) // S
        step = 128 // math.gcd(t * S, 128)            # keep th*Wrow a multiple of 128
        wsq = -(-wsq_min // step) * step
        lin = t * S * wsq + (K - 1) * wsq + (K - 1) // S + 1
        lin = -(-lin // 128) * 128                    # dense lane axis
        return wsq, lin

    th = 1
    for t in sorted((d for d in range(1, HO + 1) if HO % d == 0), reverse=True):
        wsq_t, lin_t = geom(t)
        foot = (2 * S * Cin * lin_t + 2 * Cout * t * S * wsq_t + K * K * Cout * Cin) * 4
        if foot <= vmem_budget_bytes:                 # double-buffered tile footprint
            th = t
            break
    wsq, lin = geom(th)
    wrow = S * wsq
    tlen = th * wrow
    n_h = HO // th

    # ---- fused gather: nearest-upsample + reflection-pad + halo tiling + flattening ------
    def src_idx(p, orig):
        u = p - pad
        m = orig * U
        u = jnp.where(u < 0, -u, u)
        u = jnp.where(u >= m, 2 * m - 2 - u, u)
        return jnp.clip(u // U, 0, orig - 1)

    p = jnp.arange(lin)
    row_pad = jnp.arange(n_h)[:, None] * (th * S) + (p // wsq)[None, :]    # (n_h, lin)
    col_pad = jnp.arange(S)[:, None] + (p % wsq)[None, :] * S              # (S, lin)
    row_src = src_idx(row_pad, H)
    col_src = src_idx(col_pad, W)

    nI = jnp.arange(N)[:, None, None, None, None]
    cI = jnp.arange(Cin)[None, None, None, :, None]
    rI = row_src[None, :, None, None, :]
    qI = col_src[None, None, :, None, :]
    x_tiled = x_nchw[nI, cI, rI, qI]                        # (N, n_h, S, Cin, lin)
    x_tiled = x_tiled.reshape(N, n_h, S * Cin, lin)
    # TODO(synk): this single XLA gather still materializes the ~U^2-inflated tile array in
    # HBM; removing it needs in-kernel row/column replication (sublane gather or an MXU
    # replication matmul plus a lane relayout) and is left for a follow-up.

    op_dtype = operand_dtype or x_nchw.dtype
    x_tiled = x_tiled.astype(op_dtype)
    # (K*K, Cout, Cin) per-tap weight matrices; bias as an f32 column.
    w_taps = jnp.transpose(weight, (2, 3, 0, 1)).reshape(K * K, Cout, Cin).astype(op_dtype)
    b_col = bias.reshape(Cout, 1).astype(jnp.float32)

    kernel = functools.partial(_conv_kernel, K=K, S=S, Cin=Cin, Wsq=wsq, tlen=tlen)

    out_flat = pl.pallas_call(
        kernel,
        out_shape=jax.ShapeDtypeStruct((N, Cout, HO * wrow), x_nchw.dtype),
        grid_spec=pltpu.PrefetchScalarGridSpec(
            num_scalar_prefetch=0,
            grid=(N, n_h),
            in_specs=[
                pl.BlockSpec((1, 1, S * Cin, lin), lambda b, hi: (b, hi, 0, 0)),
                pl.BlockSpec((K * K, Cout, Cin), lambda b, hi: (0, 0, 0)),
                pl.BlockSpec((Cout, 1), lambda b, hi: (0, 0)),
            ],
            out_specs=pl.BlockSpec((1, Cout, tlen), lambda b, hi: (b, 0, hi)),
        ),
        compiler_params=pltpu.CompilerParams(
            dimension_semantics=("parallel", "parallel"),
            vmem_limit_bytes=32 * 1024 * 1024),
    )(x_tiled, w_taps, b_col)

    # Row stride is Wrow >= WO: drop the few junk columns per output row (one XLA slice).
    return out_flat.reshape(N, Cout, HO, wrow)[..., :WO]


def _reference(x_nchw, weight, bias, *, kernel_size, stride, upsample=None):
    """Pure-JAX reference (lax.conv) for correctness check."""
    K = kernel_size
    pad = K // 2
    x = x_nchw
    if upsample:
        x = jnp.repeat(x, upsample, axis=2)
        x = jnp.repeat(x, upsample, axis=3)
    x = jnp.pad(x, ((0, 0), (0, 0), (pad, pad), (pad, pad)), mode="reflect")
    out = lax.conv_general_dilated(
        x, weight, window_strides=(stride, stride), padding="VALID",
        dimension_numbers=("NCHW", "OIHW", "NCHW"))
    return out + bias[None, :, None, None]


if __name__ == "__main__":
    # UpsampleConvLayer(in_channels=4, out_channels=8, kernel_size=3, stride=1, upsample=2)
    N, CIN, H, W = 2, 4, 16, 16
    COUT, K, S, UP = 8, 3, 1, 2

    key = jax.random.PRNGKey(0)
    k_x, k_w, k_b = jax.random.split(key, 3)
    x = jax.random.normal(k_x, (N, CIN, H, W), dtype=jnp.float32)
    # Deterministic parameter init (Conv2d: weight (Cout, Cin, K, K), bias (Cout,)).
    fan_in = CIN * K * K
    bound = 1.0 / (fan_in ** 0.5)
    weight = jax.random.uniform(k_w, (COUT, CIN, K, K), jnp.float32, -bound, bound)
    bias = jax.random.uniform(k_b, (COUT,), jnp.float32, -bound, bound)

    out = upsample_conv_layer(x, weight, bias, kernel_size=K, stride=S, upsample=UP)
    out = jax.block_until_ready(out)

    ref = _reference(x, weight, bias, kernel_size=K, stride=S, upsample=UP)
    assert out.shape == ref.shape == (N, COUT, H * UP, W * UP), out.shape
    max_err = float(jnp.max(jnp.abs(out - ref)))
    assert jnp.allclose(out, ref, atol=1e-4, rtol=1e-4), max_err

    print("KERNEL_OK")
</pallas_src>

<mosaic_0001>
module attributes {stable_mosaic.version = 11 : i64} {
  func.func @_conv_kernel(%arg0: i32, %arg1: i32, %arg2: memref<1x1x4x1280xf32, #tpu.memory_space<vmem>>, %arg3: memref<9x8x4xf32, #tpu.memory_space<vmem>>, %arg4: memref<8x1xf32, #tpu.memory_space<vmem>>, %arg5: memref<1x8x1152xf32, #tpu.memory_space<vmem>>) attributes {dimension_semantics = [#tpu.dimension_semantics<parallel>, #tpu.dimension_semantics<parallel>], iteration_bounds = array<i64: 2, 1>, scalar_prefetch = 0 : i64, scratch_operands = 0 : i64, tpu.core_type = #tpu.core_type<tc>, window_params = [{transform_indices = @transform_0, window_bounds = array<i64: 1, 1, 4, 1280>}, {pipeline_mode = #tpu.pipeline_mode<synchronous>, transform_indices = @transform_1, window_bounds = array<i64: 9, 8, 4>}, {pipeline_mode = #tpu.pipeline_mode<synchronous>, transform_indices = @transform_2, window_bounds = array<i64: 8, 1>}, {transform_indices = @transform_3, window_bounds = array<i64: 1, 8, 1152>}]} {
    %c0 = arith.constant 0 : index
    %c0_0 = arith.constant 0 : index
    %c0_1 = arith.constant 0 : index
    %c0_2 = arith.constant 0 : index
    %0 = vector.load %arg2[%c0, %c0_0, %c0_1, %c0_2] : memref<1x1x4x1280xf32, #tpu.memory_space<vmem>>, vector<1x1x4x1152xf32>
    %1 = vector.shape_cast %0 : vector<1x1x4x1152xf32> to vector<4x1152xf32>
    %c0_3 = arith.constant 0 : index
    %c0_4 = arith.constant 0 : index
    %c0_5 = arith.constant 0 : index
    %2 = vector.load %arg3[%c0_3, %c0_4, %c0_5] : memref<9x8x4xf32, #tpu.memory_space<vmem>>, vector<1x8x4xf32>
    %3 = vector.shape_cast %2 : vector<1x8x4xf32> to vector<8x4xf32>
    %cst = arith.constant dense<0.000000e+00> : vector<8x1152xf32>
    %4 = tpu.matmul %3, %1, %cst {dimension_numbers = #tpu.dot_dimension_numbers<[1], [0], [0], [1], [0, 0, 1, 1], [], []>} : vector<8x4xf32>, vector<4x1152xf32>, vector<8x1152xf32> -> vector<8x1152xf32>
    %c0_6 = arith.constant 0 : index
    %c0_7 = arith.constant 0 : index
    %c0_8 = arith.constant 0 : index
    %c1 = arith.constant 1 : index
    %5 = vector.load %arg2[%c0_6, %c0_7, %c0_8, %c1] : memref<1x1x4x1280xf32, #tpu.memory_space<vmem>>, vector<1x1x4x1152xf32>
    %6 = vector.shape_cast %5 : vector<1x1x4x1152xf32> to vector<4x1152xf32>
    %c1_9 = arith.constant 1 : index
    %c0_10 = arith.constant 0 : index
    %c0_11 = arith.constant 0 : index
    %7 = vector.load %arg3[%c1_9, %c0_10, %c0_11] : memref<9x8x4xf32, #tpu.memory_space<vmem>>, vector<1x8x4xf32>
    %8 = vector.shape_cast %7 : vector<1x8x4xf32> to vector<8x4xf32>
    %cst_12 = arith.constant dense<0.000000e+00> : vector<8x1152xf32>
    %9 = tpu.matmul %8, %6, %cst_12 {dimension_numbers = #tpu.dot_dimension_numbers<[1], [0], [0], [1], [0, 0, 1, 1], [], []>} : vector<8x4xf32>, vector<4x1152xf32>, vector<8x1152xf32> -> vector<8x1152xf32>
    %10 = arith.addf %4, %9 : vector<8x1152xf32>
    %c0_13 = arith.constant 0 : index
    %c0_14 = arith.constant 0 : index
    %c0_15 = arith.constant 0 : index
    %c2 = arith.constant 2 : index
    %11 = vector.load %arg2[%c0_13, %c0_14, %c0_15, %c2] : memref<1x1x4x1280xf32, #tpu.memory_space<vmem>>, vector<1x1x4x1152xf32>
    %12 = vector.shape_cast %11 : vector<1x1x4x1152xf32> to vector<4x1152xf32>
    %c2_16 = arith.constant 2 : index
    %c0_17 = arith.constant 0 : index
    %c0_18 = arith.constant 0 : index
    %13 = vector.load %arg3[%c2_16, %c0_17, %c0_18] : memref<9x8x4xf32, #tpu.memory_space<vmem>>, vector<1x8x4xf32>
    %14 = vector.shape_cast %13 : vector<1x8x4xf32> to vector<8x4xf32>
    %cst_19 = arith.constant dense<0.000000e+00> : vector<8x1152xf32>
    %15 = tpu.matmul %14, %12, %cst_19 {dimension_numbers = #tpu.dot_dimension_numbers<[1], [0], [0], [1], [0, 0, 1, 1], [], []>} : vector<8x4xf32>, vector<4x1152xf32>, vector<8x1152xf32> -> vector<8x1152xf32>
    %16 = arith.addf %10, %15 : vector<8x1152xf32>
    %c0_20 = arith.constant 0 : index
    %c0_21 = arith.constant 0 : index
    %c0_22 = arith.constant 0 : index
    %c36 = arith.constant 36 : index
    %17 = vector.load %arg2[%c0_20, %c0_21, %c0_22, %c36] : memref<1x1x4x1280xf32, #tpu.memory_space<vmem>>, vector<1x1x4x1152xf32>
    %18 = vector.shape_cast %17 : vector<1x1x4x1152xf32> to vector<4x1152xf32>
    %c3 = arith.constant 3 : index
    %c0_23 = arith.constant 0 : index
    %c0_24 = arith.constant 0 : index
    %19 = vector.load %arg3[%c3, %c0_23, %c0_24] : memref<9x8x4xf32, #tpu.memory_space<vmem>>, vector<1x8x4xf32>
    %20 = vector.shape_cast %19 : vector<1x8x4xf32> to vector<8x4xf32>
    %cst_25 = arith.constant dense<0.000000e+00> : vector<8x1152xf32>
    %21 = tpu.matmul %20, %18, %cst_25 {dimension_numbers = #tpu.dot_dimension_numbers<[1], [0], [0], [1], [0, 0, 1, 1], [], []>} : vector<8x4xf32>, vector<4x1152xf32>, vector<8x1152xf32> -> vector<8x1152xf32>
    %22 = arith.addf %16, %21 : vector<8x1152xf32>
    %c0_26 = arith.constant 0 : index
    %c0_27 = arith.constant 0 : index
    %c0_28 = arith.constant 0 : index
    %c37 = arith.constant 37 : index
    %23 = vector.load %arg2[%c0_26, %c0_27, %c0_28, %c37] : memref<1x1x4x1280xf32, #tpu.memory_space<vmem>>, vector<1x1x4x1152xf32>
    %24 = vector.shape_cast %23 : vector<1x1x4x1152xf32> to vector<4x1152xf32>
    %c4 = arith.constant 4 : index
    %c0_29 = arith.constant 0 : index
    %c0_30 = arith.constant 0 : index
    %25 = vector.load %arg3[%c4, %c0_29, %c0_30] : memref<9x8x4xf32, #tpu.memory_space<vmem>>, vector<1x8x4xf32>
    %26 = vector.shape_cast %25 : vector<1x8x4xf32> to vector<8x4xf32>
    %cst_31 = arith.constant dense<0.000000e+00> : vector<8x1152xf32>
    %27 = tpu.matmul %26, %24, %cst_31 {dimension_numbers = #tpu.dot_dimension_numbers<[1], [0], [0], [1], [0, 0, 1, 1], [], []>} : vector<8x4xf32>, vector<4x1152xf32>, vector<8x1152xf32> -> vector<8x1152xf32>
    %28 = arith.addf %22, %27 : vector<8x1152xf32>
    %c0_32 = arith.constant 0 : index
    %c0_33 = arith.constant 0 : index
    %c0_34 = arith.constant 0 : index
    %c38 = arith.constant 38 : index
    %29 = vector.load %arg2[%c0_32, %c0_33, %c0_34, %c38] : memref<1x1x4x1280xf32, #tpu.memory_space<vmem>>, vector<1x1x4x1152xf32>
    %30 = vector.shape_cast %29 : vector<1x1x4x1152xf32> to vector<4x1152xf32>
    %c5 = arith.constant 5 : index
    %c0_35 = arith.constant 0 : index
    %c0_36 = arith.constant 0 : index
    %31 = vector.load %arg3[%c5, %c0_35, %c0_36] : memref<9x8x4xf32, #tpu.memory_space<vmem>>, vector<1x8x4xf32>
    %32 = vector.shape_cast %31 : vector<1x8x4xf32> to vector<8x4xf32>
    %cst_37 = arith.constant dense<0.000000e+00> : vector<8x1152xf32>
    %33 = tpu.matmul %32, %30, %cst_37 {dimension_numbers = #tpu.dot_dimension_numbers<[1], [0], [0], [1], [0, 0, 1, 1], [], []>} : vector<8x4xf32>, vector<4x1152xf32>, vector<8x1152xf32> -> vector<8x1152xf32>
    %34 = arith.addf %28, %33 : vector<8x1152xf32>
    %c0_38 = arith.constant 0 : index
    %c0_39 = arith.constant 0 : index
    %c0_40 = arith.constant 0 : index
    %c72 = arith.constant 72 : index
    %35 = vector.load %arg2[%c0_38, %c0_39, %c0_40, %c72] : memref<1x1x4x1280xf32, #tpu.memory_space<vmem>>, vector<1x1x4x1152xf32>
    %36 = vector.shape_cast %35 : vector<1x1x4x1152xf32> to vector<4x1152xf32>
    %c6 = arith.constant 6 : index
    %c0_41 = arith.constant 0 : index
    %c0_42 = arith.constant 0 : index
    %37 = vector.load %arg3[%c6, %c0_41, %c0_42] : memref<9x8x4xf32, #tpu.memory_space<vmem>>, vector<1x8x4xf32>
    %38 = vector.shape_cast %37 : vector<1x8x4xf32> to vector<8x4xf32>
    %cst_43 = arith.constant dense<0.000000e+00> : vector<8x1152xf32>
    %39 = tpu.matmul %38, %36, %cst_43 {dimension_numbers = #tpu.dot_dimension_numbers<[1], [0], [0], [1], [0, 0, 1, 1], [], []>} : vector<8x4xf32>, vector<4x1152xf32>, vector<8x1152xf32> -> vector<8x1152xf32>
    %40 = arith.addf %34, %39 : vector<8x1152xf32>
    %c0_44 = arith.constant 0 : index
    %c0_45 = arith.constant 0 : index
    %c0_46 = arith.constant 0 : index
    %c73 = arith.constant 73 : index
    %41 = vector.load %arg2[%c0_44, %c0_45, %c0_46, %c73] : memref<1x1x4x1280xf32, #tpu.memory_space<vmem>>, vector<1x1x4x1152xf32>
    %42 = vector.shape_cast %41 : vector<1x1x4x1152xf32> to vector<4x1152xf32>
    %c7 = arith.constant 7 : index
    %c0_47 = arith.constant 0 : index
    %c0_48 = arith.constant 0 : index
    %43 = vector.load %arg3[%c7, %c0_47, %c0_48] : memref<9x8x4xf32, #tpu.memory_space<vmem>>, vector<1x8x4xf32>
    %44 = vector.shape_cast %43 : vector<1x8x4xf32> to vector<8x4xf32>
    %cst_49 = arith.constant dense<0.000000e+00> : vector<8x1152xf32>
    %45 = tpu.matmul %44, %42, %cst_49 {dimension_numbers = #tpu.dot_dimension_numbers<[1], [0], [0], [1], [0, 0, 1, 1], [], []>} : vector<8x4xf32>, vector<4x1152xf32>, vector<8x1152xf32> -> vector<8x1152xf32>
    %46 = arith.addf %40, %45 : vector<8x1152xf32>
    %c0_50 = arith.constant 0 : index
    %c0_51 = arith.constant 0 : index
    %c0_52 = arith.constant 0 : index
    %c74 = arith.constant 74 : index
    %47 = vector.load %arg2[%c0_50, %c0_51, %c0_52, %c74] : memref<1x1x4x1280xf32, #tpu.memory_space<vmem>>, vector<1x1x4x1152xf32>
    %48 = vector.shape_cast %47 : vector<1x1x4x1152xf32> to vector<4x1152xf32>
    %c8 = arith.constant 8 : index
    %c0_53 = arith.constant 0 : index
    %c0_54 = arith.constant 0 : index
    %49 = vector.load %arg3[%c8, %c0_53, %c0_54] : memref<9x8x4xf32, #tpu.memory_space<vmem>>, vector<1x8x4xf32>
    %50 = vector.shape_cast %49 : vector<1x8x4xf32> to vector<8x4xf32>
    %cst_55 = arith.constant dense<0.000000e+00> : vector<8x1152xf32>
    %51 = tpu.matmul %50, %48, %cst_55 {dimension_numbers = #tpu.dot_dimension_numbers<[1], [0], [0], [1], [0, 0, 1, 1], [], []>} : vector<8x4xf32>, vector<4x1152xf32>, vector<8x1152xf32> -> vector<8x1152xf32>
    %52 = arith.addf %46, %51 : vector<8x1152xf32>
    %c0_56 = arith.constant 0 : index
    %c0_57 = arith.constant 0 : index
    %53 = vector.load %arg4[%c0_56, %c0_57] : memref<8x1xf32, #tpu.memory_space<vmem>>, vector<8x1xf32>
    %54 = vector.broadcast %53 : vector<8x1xf32> to vector<8x1152xf32>
    %55 = arith.addf %52, %54 : vector<8x1152xf32>
    %c0_58 = arith.constant 0 : index
    %c0_59 = arith.constant 0 : index
    %c0_60 = arith.constant 0 : index
    %56 = vector.load %arg5[%c0_58, %c0_59, %c0_60] : memref<1x8x1152xf32, #tpu.memory_space<vmem>>, vector<1x8x1152xf32>
    %57 = vector.shape_cast %56 : vector<1x8x1152xf32> to vector<8x1152xf32>
    %58 = vector.shape_cast %55 : vector<8x1152xf32> to vector<1x8x1152xf32>
    tpu.vector_store %arg5[%c0_58, %c0_59, %c0_60], %58 {strides = array<i32>} : memref<1x8x1152xf32, #tpu.memory_space<vmem>>, vector<1x8x1152xf32>,
    return
  }
  func.func @transform_0(%arg0: i32, %arg1: i32) -> (i32, i32, i32, i32) {
    %c0_i32 = arith.constant 0 : i32
    %c0_i32_0 = arith.constant 0 : i32
    %c0_i32_1 = arith.constant 0 : i32
    return %arg0, %arg1, %c0_i32, %c0_i32_0 : i32, i32, i32, i32
  }
  func.func @transform_1(%arg0: i32, %arg1: i32) -> (i32, i32, i32) {
    %c0_i32 = arith.constant 0 : i32
    %c0_i32_0 = arith.constant 0 : i32
    %c0_i32_1 = arith.constant 0 : i32
    %c0_i32_2 = arith.constant 0 : i32
    return %c0_i32, %c0_i32_0, %c0_i32_1 : i32, i32, i32
  }
  func.func @transform_2(%arg0: i32, %arg1: i32) -> (i32, i32) {
    %c0_i32 = arith.constant 0 : i32
    %c0_i32_0 = arith.constant 0 : i32
    %c0_i32_1 = arith.constant 0 : i32
    return %c0_i32, %c0_i32_0 : i32, i32
  }
  func.func @transform_3(%arg0: i32, %arg1: i32) -> (i32, i32, i32) {
    %c0_i32 = arith.constant 0 : i32
    %c0_i32_0 = arith.constant 0 : i32
    return %arg0, %c0_i32, %arg1 : i32, i32, i32
  }
}

</mosaic_0001>

<bundles_post_ra>
// kernel: tpu_custom_call.1
= control target key start
LH: loop header
LB: loop body
LE: loop exit
PB: predicated region body
PF: predicated region fallthrough
CT: control target
= control target key end

     0   :  { %8 = vsyncpa [#allocation3], 0  ;;  %s5171_s0 = inlined_call_operand.vmem [shape: f32[2,1,4,1280], index: 0, kind: input, shape index: {}]   ;;  %s5172_s1 = inlined_call_operand.vmem [shape: f32[9,8,4], index: 1, kind: input, shape index: {}]   ;;  %s5173_s2 = inlined_call_operand.vmem [shape: f32[8,1], index: 2, kind: input, shape index: {}]   ;;  %s5174_s3 = inlined_call_operand.hbm [shape: f32[2,8,1152], index: 3, kind: output, shape index: {}]  }
   0x1   :  { %10 = vsyncpa [#allocation3 + $0x1], 0  ;;  %s4606_s12 = smov 0   ;;  %s4608_s13 = smov 0  }
   0x2   :  { %s4610_s14 = smov 0   ;;  %s4612_s15 = smov 0  }
   0x3   :  { %s4614_s16 = smov 0   ;;  %s4616_s17 = smov 0  }
   0x4 LB: > { %s4149_s18 = sadd.s32 4294967295, %s4572_s17   ;;  %s4150_s19 = sadd.s32 4294967294, %s4572_s17   ;;  %s4572_s17 = sphi %s4616_s17, %s16_s17   ;;  %s4568_s16 = sphi %s4614_s16, %s5181_s16   ;;  %s4564_s15 = sphi %s4612_s15, %s5180_s15   ;;  %s4560_s14 = sphi %s4610_s14, %s5179_s14   ;;  %s4556_s13 = sphi %s4608_s13, %s5178_s13   ;;  %s4552_s12 = sphi %s4606_s12, %s5177_s12  }
   0x5   : > { %s28_s20 = sadd.s32 1, %s4568_s16  ;;  %s107_s21 = sadd.s32 1, %s4560_s14 }
   0x6   : > { %p30_p0 = scmp.ge.s32.totalorder %s28_s20, 2  ;;  %p117_p1 = scmp.ne.s32.totalorder %s4560_s14, %s4556_s13 }
   0x7   : > { %p118_p2 = scmp.eq.s32.totalorder %s4149_s18, 1  ;;  %p123_p3 = scmp.ne.s32.totalorder %s4556_s13, %s4552_s12 }
   0x8   : > { %s5183_s20 = smov (%p30_p0, %s28_s20), 0  ;;  %p124_p5 = scmp.eq.s32.totalorder %s4150_s19, 1 }
   0x9   : > { %p4646_p4 = por %p118_p2, %p117_p1  ;;  %s102_s23 = ssub.s32 %s4568_s16, %s5183_s20 }
   0xa   : > { %p4153_p6 = scmp.ge.s32.totalorder %s4572_s17, 1  ;;  %p105_p7 = scmp.eq.s32.totalorder %s102_s23, 0 }
   0xb   : > { %p4653_p8 = por %p124_p5, %p123_p3  ;;  %p160_p9 = scmp.lt.s32.totalorder %s4572_s17, 3 }
   0xc   : > { %s4659_s25 = scalar_select %p105_p7, %s4560_s14, %s107_s21  }
   0xd   : > { %p161_p10 = pnand %p4153_p6, %p160_p9 }
   0xe   : > { %p188_p11 = scmp.lt.s32.totalorder (!%p161_p10), %s4564_s15, 1  ;;  %v4574_v0 = vmov (!%p161_p10), 0.0   ;;  %s4575_s4 = smov (!%p161_p10), 127   ;;  %vm241_vm0 = vcmask (!%p161_p10), 1039360   ;;  %vm255_vm1 = vcmask (!%p161_p10), 1043456   ;;  %v4155_v19 = vld [vmem:[%s5172_s1 + $0x8] sm:$0xff] (!%p161_p10) }
   0xf   : > { %164 = sbr.rel (%p161_p10) target bundleno = 536 (0x218), region = 32  ;;  %338 = vmatprep.mubr.f32.mxu0 (!%p161_p10), %v4574_v0  ;;  %409 = vmatprep.mubr.f32.mxu1 (!%p161_p10), %v4574_v0  ;;  %s4576_s5 = smov (!%p161_p10), 126   ;;  %vm251_vm2 = vcmask (!%p161_p10), 31744   ;;  %vm4582_vm3 = vmmov (!%p161_p10), 0   ;;  %v203_v33 = vld [vmem:[%s5172_s1] sm:$0xff] (!%p161_p10)  ;;  %vm1049_vm4 = vcmask (!%p161_p10), 1031168  }
  0x10   : > { %s4577_s6 = smov (!%p161_p10), 92   ;;  %s4578_s7 = smov (!%p161_p10), 91   ;;  %v4184_v44 = vld [vmem:[%s5172_s1 + $0x10] sm:$0xff] (!%p161_p10)  ;;  %vm1480_vm5 = vcmask (!%p161_p10), 752640   ;;  %v4199_v62 = vld [vmem:[%s5172_s1 + $0x18] sm:$0xff] (!%p161_p10)  ;;  %vm1911_vm6 = vcmask (!%p161_p10), 744448  }
  0x11   : > { %s4579_s8 = smov (!%p161_p10), 90   ;;  %s4580_s9 = smov (!%p161_p10), 56   ;;  %vm2342_vm7 = vcmask (!%p161_p10), 736256   ;;  %vm2773_vm8 = vcmask (!%p161_p10), 457728   ;;  %vm3204_vm9 = vcmask (!%p161_p10), 449536   ;;  %vm3635_vm10 = vcmask (!%p161_p10), 441344  }
  0x12   : > { %s4581_s10 = smov (!%p161_p10), 55   ;;  %s4583_s19 = smov (!%p161_p10), 54  }
  0x13   : > { %s185_s23 = sand.u32 (!%p161_p10), 1, %s4556_s13   ;;  %s4421_s28 = smul.u32 (!%p161_p10), 1152, %s4564_s15 }
  0x16   : > { %s189_s26 = scalar_select %p188_p11, %s4564_s15, 1 }
  0x17   : > { %s4054_s15 = scalar_lea.sflag [#allocation3], %s185_s23 }
  0x18   : > { %s4420_s27 = smul.u32 40, %s189_s26 }
  0x19   : > { %s4419_s26 = smul.u32 72, %s185_s23 }
  0x1a   : > { %s4666_s30 = scalar_lea.vmem %s5171_s0, %s4420_s27 }
  0x1b   : > { %v4671_v1 = vld [vmem:[%s4666_s30 + $0x8] sm:$0xff]  ;;  %v4674_v2 = vld [vmem:[%s4666_s30] sm:$0xff]  ;;  %v4679_v3 = vld [vmem:[%s4666_s30 + $0x10] sm:$0xff]  ;;  %s5106_s27 = scalar_lea.vmem [#allocation2], %s4419_s26 }
  0x1c   : > { %225 = vrot.lane.b32.xlu0 %v4671_v1, %s4575_s4  ;;  %221 = vrot.lane.b32.xlu1 %v4674_v2, %s4575_s4  ;;  %v4682_v4 = vld [vmem:[%s4666_s30 + $0x18] sm:$0xff]  ;;  %v4686_v5 = vcombine.high %v4679_v3, %v4679_v3  ;;  %v4690_v6 = vcombine.high %v4671_v1, %v4671_v1  ;;  %v4694_v7 = vcombine.high %v4674_v2, %v4674_v2  ;;  %v4705_v9 = vld [vmem:[%s4666_s30 + $0x20] sm:$0xff]  ;;  %s4070_s29 = sshll.u32 %s5106_s27, 4  ;;  %s5121_s29 = int_to_ptr.vmem [resolvable:$true] %s4070_s29 }
  0x1d   : > { %v4700_v8 = vcombine.high %v4682_v4, %v4682_v4  ;;  %v4711_v10 = vcombine.high %v4705_v9, %v4705_v9  ;;  %v202_v43 = vld [vmem:[%s4666_s30 + $0x20] sm:$0xf] }
  0x20   : > { %233 = vrot.lane.b32.xlu0 %v4682_v4, %s4575_s4  ;;  %231 = vrot.lane.b32.xlu1 %v4686_v5, %s4575_s4 }
  0x24   : > { %227 = vrot.lane.b32.xlu1 %v4690_v6, %s4575_s4  ;;  %223 = vrot.lane.b32.xlu0 %v4694_v7, %s4575_s4 }
  0x28   : > { %235 = vrot.lane.b32.xlu1 %v4700_v8, %s4575_s4  ;;  %229 = vrot.lane.b32.xlu0 %v4679_v3, %s4575_s4 }
  0x2c   : > { %239 = vrot.lane.b32.xlu1 %v4711_v10, %s4575_s4  ;;  %237 = vrot.lane.b32.xlu0 %v4705_v9, %s4575_s4 }
  0x30   : > { %1033 = vrot.lane.b32.xlu1 %v4671_v1, %s4576_s5  ;;  %1031 = vrot.lane.b32.xlu0 %v4694_v7, %s4576_s5 }
  0x34   : > { %1039 = vrot.lane.b32.xlu1 %v4686_v5, %s4576_s5  ;;  %1029 = vrot.lane.b32.xlu0 %v4674_v2, %s4576_s5 }
  0x38   : > { %1035 = vrot.lane.b32.xlu1 %v4690_v6, %s4576_s5  ;;  %1041 = vrot.lane.b32.xlu0 %v4682_v4, %s4576_s5 }
  0x3c   : > { %1043 = vrot.lane.b32.xlu1 %v4700_v8, %s4576_s5  ;;  %1037 = vrot.lane.b32.xlu0 %v4679_v3, %s4576_s5 }
  0x40   : > { %1047 = vrot.lane.b32.xlu1 %v4711_v10, %s4576_s5  ;;  %1045 = vrot.lane.b32.xlu0 %v4705_v9, %s4576_s5  ;;  %s5119_s5 = scalar_lea.hbm %s5174_s3, %s4421_s28 }
  0x44   : > { %1464 = vrot.lane.b32.xlu1 %v4671_v1, %s4577_s6  ;;  %1462 = vrot.lane.b32.xlu0 %v4694_v7, %s4577_s6 }
  0x48   : > { %1466 = vrot.lane.b32.xlu1 %v4690_v6, %s4577_s6  ;;  %1460 = vrot.lane.b32.xlu0 %v4674_v2, %s4577_s6 }
  0x4c   : > { %1470 = vrot.lane.b32.xlu1 %v4686_v5, %s4577_s6  ;;  %1468 = vrot.lane.b32.xlu0 %v4679_v3, %s4577_s6 }
  0x50   : > { %1474 = vrot.lane.b32.xlu1 %v4700_v8, %s4577_s6  ;;  %1472 = vrot.lane.b32.xlu0 %v4682_v4, %s4577_s6 }
  0x54   : > { %1893 = vrot.lane.b32.xlu1 %v4694_v7, %s4578_s7  ;;  %1476 = vrot.lane.b32.xlu0 %v4705_v9, %s4577_s6 }
  0x58   : > { %1891 = vrot.lane.b32.xlu1 %v4674_v2, %s4578_s7  ;;  %1895 = vrot.lane.b32.xlu0 %v4671_v1, %s4578_s7 }
  0x5c   : > { %1901 = vrot.lane.b32.xlu1 %v4686_v5, %s4578_s7  ;;  %1478 = vrot.lane.b32.xlu0 %v4711_v10, %s4577_s6  ;;  %s4494_s6 = scalar_lea.vmem %s5121_s29, 1152 }
  0x5d   : > { %p4495_p12 = scmp.ne.s32.totalorder %s5121_s29, %s4494_s6 }
  0x5f   : > { %p4496_p13 = pnand %p4495_p12, %p4646_p4 }
  0x60   : > { %1897 = vrot.lane.b32.xlu1 %v4690_v6, %s4578_s7  ;;  %1903 = vrot.lane.b32.xlu0 %v4682_v4, %s4578_s7 }
  0x61   : > { %p4497_p0 = pneg %p4496_p13 }
  0x64   : > { %1905 = vrot.lane.b32.xlu1 %v4700_v8, %s4578_s7  ;;  %1899 = vrot.lane.b32.xlu0 %v4679_v3, %s4578_s7 }
  0x68   : > { %1909 = vrot.lane.b32.xlu1 %v4711_v10, %s4578_s7  ;;  %1907 = vrot.lane.b32.xlu0 %v4705_v9, %s4578_s7  ;;  %s4585_s7 = smov [#allocation2]  }
  0x6c   : > { %2326 = vrot.lane.b32.xlu1 %v4671_v1, %s4579_s8  ;;  %2324 = vrot.lane.b32.xlu0 %v4694_v7, %s4579_s8 }
  0x70   : > { %2328 = vrot.lane.b32.xlu1 %v4690_v6, %s4579_s8  ;;  %2322 = vrot.lane.b32.xlu0 %v4674_v2, %s4579_s8 }
  0x74   : > { %2332 = vrot.lane.b32.xlu1 %v4686_v5, %s4579_s8  ;;  %2330 = vrot.lane.b32.xlu0 %v4679_v3, %s4579_s8 }
  0x78   : > { %2336 = vrot.lane.b32.xlu1 %v4700_v8, %s4579_s8  ;;  %2334 = vrot.lane.b32.xlu0 %v4682_v4, %s4579_s8 }
  0x7c   : > { %2755 = vrot.lane.b32.xlu1 %v4694_v7, %s4580_s9  ;;  %2338 = vrot.lane.b32.xlu0 %v4705_v9, %s4579_s8 }
  0x80   : > { %2753 = vrot.lane.b32.xlu1 %v4674_v2, %s4580_s9  ;;  %2757 = vrot.lane.b32.xlu0 %v4671_v1, %s4580_s9 }
  0x84   : > { %2763 = vrot.lane.b32.xlu1 %v4686_v5, %s4580_s9  ;;  %2340 = vrot.lane.b32.xlu0 %v4711_v10, %s4579_s8  ;;  %s4498_s8 = sshll.u32 %s4585_s7, 4  ;;  %s4499_s8 = int_to_ptr.vmem [resolvable:$false] %s4498_s8 }
  0x85   : > { %p4501_p1 = scmp.lt.s32.totalorder %s5121_s29, %s4499_s8 }
  0x88   : > { %2759 = vrot.lane.b32.xlu1 %v4690_v6, %s4580_s9  ;;  %2765 = vrot.lane.b32.xlu0 %v4682_v4, %s4580_s9 }
  0x8c   : > { %2767 = vrot.lane.b32.xlu1 %v4700_v8, %s4580_s9  ;;  %2761 = vrot.lane.b32.xlu0 %v4679_v3, %s4580_s9 }
  0x8e   : > { %v226_v11 = vpop.permute.xlu0 %225  ;;  %v222_v12 = vpop.permute.xlu1 %221 }
  0x90   : > { %2771 = vrot.lane.b32.xlu1 %v4711_v10, %s4580_s9  ;;  %2769 = vrot.lane.b32.xlu0 %v4705_v9, %s4580_s9  ;;  %s4500_s9 = scalar_lea.vmem %s4499_s8, 2304 }
  0x91   : > { %p4502_p2 = scmp.lt.s32.totalorder %s4500_s9, %s4494_s6 }
  0x92   : > { %v234_v13 = vpop.permute.xlu0 %233  ;;  %v232_v14 = vpop.permute.xlu1 %231 }
  0x93   : > { %v247_v20 = vsel %vm241_vm0, %v232_v14, %v234_v13  ;;  %p4503_p3 = por %p4502_p2, %p4501_p1 }
  0x94   : > { %3188 = vrot.lane.b32.xlu1 %v4671_v1, %s4581_s10  ;;  %3186 = vrot.lane.b32.xlu0 %v4694_v7, %s4581_s10 }
  0x95   : > { %p4504_p5 = pnand %p4503_p3, %p4497_p0 }
  0x96   : > { %v228_v15 = vpop.permute.xlu1 %227  ;;  %v224_v16 = vpop.permute.xlu0 %223 }
  0x97   : > { %v243_v17 = vsel %vm241_vm0, %v224_v16, %v226_v11  ;;  %v242_v18 = vsel %vm241_vm0, %v222_v12, %v224_v16  ;;  %v244_v25 = vsel %vm241_vm0, %v226_v11, %v228_v15 }
  0x98   : > { %3190 = vrot.lane.b32.xlu1 %v4690_v6, %s4581_s10  ;;  %3184 = vrot.lane.b32.xlu0 %v4674_v2, %s4581_s10 }
  0x99   : > { %4156 = vmatprep.subr.msk.mxu0 %vm255_vm1, %v243_v17 }
  0x9a   : > { %4157 = vmatpush1.msk.msra.mxu0 %vm255_vm1, %v242_v18  ;;  %v236_v21 = vpop.permute.xlu1 %235  ;;  %v230_v22 = vpop.permute.xlu0 %229 }
  0x9b   : > { %4158 = vmatmul.mubr.msk.f32.vlgmr.msra.gmra.mrb[0].mxu0 %vm251_vm2, %v4155_v19  ;;  %4162 = vmatprep.subr.msk.mxu0 %vm255_vm1, %v247_v20  ;;  %v246_v23 = vsel %vm241_vm0, %v230_v22, %v232_v14  ;;  %v245_v24 = vsel %vm241_vm0, %v228_v15, %v230_v22  ;;  %v248_v30 = vsel %vm241_vm0, %v234_v13, %v236_v21  ;;  %v4214_v15 = vld [vmem:[%s5172_s1 + $0x20] sm:$0xff] }
  0x9c   : > { %3194 = vrot.lane.b32.xlu1 %v4686_v5, %s4581_s10  ;;  %3192 = vrot.lane.b32.xlu0 %v4679_v3, %s4581_s10 }
  0x9d   : > { %4159 = vmatprep.subr.msk.mxu1 %vm255_vm1, %v245_v24  ;;  %4163 = vmatpush1.msk.msra.mxu0 %vm255_vm1, %v246_v23 }
  0x9e   : > { %4160 = vmatpush1.msk.msra.mxu1 %vm255_vm1, %v244_v25  ;;  %480 = vmatprep.mubr.f32.mxu0 %v4574_v0  ;;  %v240_v26 = vpop.permute.xlu1 %239  ;;  %v238_v27 = vpop.permute.xlu0 %237 }
  0x9f   : > { %4164 = vmatmul.mubr.msk.f32.vlgmr.msra.gmra.mrb[2].mxu0 %vm251_vm2, %v4155_v19  ;;  %v249_v28 = vsel %vm241_vm0, %v236_v21, %v238_v27  ;;  %v250_v29 = vsel %vm241_vm0, %v238_v27, %v240_v26  ;;  %4310 = vmatprep.subr.mxu0 %v4574_v0 }
  0xa0   : > { %3198 = vrot.lane.b32.xlu1 %v4700_v8, %s4581_s10  ;;  %3196 = vrot.lane.b32.xlu0 %v4682_v4, %s4581_s10 }
  0xa1   : > { %4165 = vmatprep.subr.msk.mxu1 %vm255_vm1, %v249_v28  ;;  %4311 = vmatpush3.msk.msra.mxu0 %vm255_vm1, %v250_v29 }
  0xa2   : > { %4161 = vmatmul.mubr.msk.f32.vlgmr.msra.gmra.mrb[0].mxu1 %vm251_vm2, %v4155_v19  ;;  %4312 = vmatprep.mubr.msk.f32.mxu0 %vm4582_vm3, %v4574_v0  ;;  %v1034_v31 = vpop.permute.xlu1 %1033  ;;  %v1032_v32 = vpop.permute.xlu0 %1031 }
  0xa3   : > { %4166 = vmatpush1.msk.msra.mxu1 %vm255_vm1, %v248_v30  ;;  %4313 = vmatmul.mubr.msk.f32.vlgmr.msra.gmra.mrb[4].mxu0 %vm251_vm2, %v4155_v19  ;;  %v1051_v36 = vsel %vm1049_vm4, %v1032_v32, %v1034_v31 }
  0xa4   : > { %4170 = vmatprep.subr.msk.mxu0 %vm255_vm1, %v4694_v7  ;;  %3617 = vrot.lane.b32.xlu1 %v4694_v7, %s4583_s19 }
  0xa5   : > { %3200 = vrot.lane.b32.xlu0 %v4705_v9, %s4581_s10  ;;  %551 = vmatprep.mubr.f32.mxu1 %v4574_v0 }
  0xa6   : > { %4171 = vmatpush1.msk.msra.mxu0 %vm255_vm1, %v4674_v2  ;;  %4167 = vmatmul.mubr.msk.f32.vlgmr.msra.gmra.mrb[2].mxu1 %vm251_vm2, %v4155_v19  ;;  %v1040_v34 = vpop.permute.xlu1 %1039  ;;  %v1030_v35 = vpop.permute.xlu0 %1029 }
  0xa7   : > { %722 = vmatprep.mubr.f32.mxu0 %v4574_v0  ;;  %4176 = vmatprep.subr.msk.mxu0 %vm255_vm1, %v4686_v5  ;;  %v1050_v39 = vsel %vm1049_vm4, %v1030_v35, %v1032_v32 }
  0xa8   : > { %4172 = vmatmul.mubr.msk.f32.vlgmr.msra.gmra.mrb[0].mxu0 %vm251_vm2, %v203_v33  ;;  %4173 = vmatprep.subr.msk.mxu1 %vm255_vm1, %v4690_v6 }
  0xa9   : > { %4177 = vmatpush1.msk.msra.mxu0 %vm255_vm1, %v4679_v3  ;;  %3615 = vrot.lane.b32.xlu1 %v4674_v2, %s4583_s19 }
  0xaa   : > { %4185 = vmatprep.subr.msk.mxu0 %vm255_vm1, %v1051_v36  ;;  %3619 = vrot.lane.b32.xlu0 %v4671_v1, %s4583_s19  ;;  %v1036_v37 = vpop.permute.xlu1 %1035  ;;  %v1042_v38 = vpop.permute.xlu0 %1041 }
  0xab   : > { %4174 = vmatpush1.msk.msra.mxu1 %vm255_vm1, %v4671_v1  ;;  %793 = vmatprep.mubr.f32.mxu1 %v4574_v0  ;;  %v1055_v40 = vsel %vm1049_vm4, %v1040_v34, %v1042_v38  ;;  %v1052_v49 = vsel %vm1049_vm4, %v1034_v31, %v1036_v37 }
  0xac   : > { %4175 = vmatmul.mubr.msk.f32.vlgmr.msra.gmra.mrb[0].mxu1 %vm251_vm2, %v203_v33  ;;  %864 = vmatprep.mubr.f32.mxu0 %v4574_v0 }
  0xad   : > { %4178 = vmatmul.mubr.msk.f32.vlgmr.msra.gmra.mrb[2].mxu0 %vm251_vm2, %v203_v33  ;;  %4179 = vmatprep.subr.msk.mxu1 %vm255_vm1, %v4700_v8 }
  0xae   : > { %4186 = vmatpush1.msk.msra.mxu0 %vm255_vm1, %v1050_v39  ;;  %3625 = vrot.lane.b32.xlu1 %v4686_v5, %s4583_s19  ;;  %v1044_v41 = vpop.permute.xlu1 %1043  ;;  %v1038_v42 = vpop.permute.xlu0 %1037 }
  0xaf   : > { %3202 = vrot.lane.b32.xlu0 %v4711_v10, %s4581_s10  ;;  %4180 = vmatpush1.msk.msra.mxu1 %vm255_vm1, %v4682_v4  ;;  %v1053_v45 = vsel %vm1049_vm4, %v1036_v37, %v1038_v42  ;;  %v1054_v46 = vsel %vm1049_vm4, %v1038_v42, %v1040_v34  ;;  %v1056_v57 = vsel %vm1049_vm4, %v1042_v38, %v1044_v41  ;;  %v4229_v37 = vld [vmem:[%s5172_s1 + $0x28] sm:$0xff] }
  0xb0   : > { %935 = vmatprep.mubr.f32.mxu1 %v4574_v0  ;;  %4191 = vmatprep.subr.msk.mxu0 %vm255_vm1, %v1055_v40 }
  0xb1   : > { %4181 = vmatmul.mubr.msk.f32.vlgmr.msra.gmra.mrb[2].mxu1 %vm251_vm2, %v203_v33  ;;  %4315 = vmatprep.subr.mxu1 %v4574_v0 }
  0xb2   : > { %4316 = vmatpush3.msk.msra.mxu1 %vm255_vm1, %v202_v43  ;;  %1144 = vmatprep.mubr.f32.mxu0 %v4574_v0  ;;  %v1048_v47 = vpop.permute.xlu1 %1047  ;;  %v1046_v48 = vpop.permute.xlu0 %1045 }
  0xb3   : > { %3621 = vrot.lane.b32.xlu1 %v4690_v6, %s4583_s19  ;;  %3627 = vrot.lane.b32.xlu0 %v4682_v4, %s4583_s19  ;;  %v1057_v52 = vsel %vm1049_vm4, %v1044_v41, %v1046_v48  ;;  %v1058_v53 = vsel %vm1049_vm4, %v1046_v48, %v1048_v47  ;;  %v4029_v4 = vld [vmem:[%s5173_s2] sm:$0xff] }
  0xb4   : > { %4317 = vmatprep.mubr.msk.f32.mxu1 %vm4582_vm3, %v4574_v0  ;;  %4187 = vmatmul.mubr.msk.f32.vlgmr.msra.gmra.mrb[0].mxu0 %vm251_vm2, %v4184_v44 }
  0xb5   : > { %4188 = vmatprep.subr.msk.mxu1 %vm255_vm1, %v1053_v45  ;;  %4192 = vmatpush1.msk.msra.mxu0 %vm255_vm1, %v1054_v46 }
  0xb6   : > { %4318 = vmatmul.mubr.msk.f32.vlgmr.msra.gmra.mrb[4].mxu1 %vm251_vm2, %v203_v33  ;;  %1286 = vmatprep.mubr.f32.mxu0 %v4574_v0  ;;  %v1465_v50 = vpop.permute.xlu1 %1464  ;;  %v1463_v51 = vpop.permute.xlu0 %1462 }
  0xb7   : > { %4189 = vmatpush1.msk.msra.mxu1 %vm255_vm1, %v1052_v49  ;;  %4320 = vmatprep.subr.mxu0 %v4574_v0  ;;  %v1482_v54 = vsel %vm1480_vm5, %v1463_v51, %v1465_v50 }
  0xb8   : > { %3629 = vrot.lane.b32.xlu1 %v4700_v8, %s4583_s19  ;;  %3623 = vrot.lane.b32.xlu0 %v4679_v3, %s4583_s19  ;;  %v4584_v3 = vmov 0  }
  0xb9   : > { %1215 = vmatprep.mubr.f32.mxu1 %v4574_v0  ;;  %4193 = vmatmul.mubr.msk.f32.vlgmr.msra.gmra.mrb[2].mxu0 %vm251_vm2, %v4184_v44 }
  0xba   : > { %4194 = vmatprep.subr.msk.mxu1 %vm255_vm1, %v1057_v52  ;;  %4321 = vmatpush3.msk.msra.mxu0 %vm255_vm1, %v1058_v53  ;;  %v1467_v55 = vpop.permute.xlu1 %1466  ;;  %v1461_v56 = vpop.permute.xlu0 %1460 }
  0xbb   : > { %4190 = vmatmul.mubr.msk.f32.vlgmr.msra.gmra.mrb[0].mxu1 %vm251_vm2, %v4184_v44  ;;  %4200 = vmatprep.subr.msk.mxu0 %vm255_vm1, %v1482_v54  ;;  %v1481_v58 = vsel %vm1480_vm5, %v1461_v56, %v1463_v51  ;;  %v1483_v63 = vsel %vm1480_vm5, %v1465_v50, %v1467_v55 }
  0xbc   : > { %4195 = vmatpush1.msk.msra.mxu1 %vm255_vm1, %v1056_v57  ;;  %3633 = vrot.lane.b32.xlu1 %v4711_v10, %s4583_s19 }
  0xbd   : > { %3631 = vrot.lane.b32.xlu0 %v4705_v9, %s4583_s19  ;;  %4322 = vmatprep.mubr.msk.f32.mxu0 %vm4582_vm3, %v4574_v0 }
  0xbe   : > { %4323 = vmatmul.mubr.msk.f32.vlgmr.msra.gmra.mrb[6].mxu0 %vm251_vm2, %v4184_v44  ;;  %v1471_v59 = vpop.permute.xlu1 %1470  ;;  %v1469_v60 = vpop.permute.xlu0 %1468  ;;  %1357 = vmatprep.mubr.f32.mxu1 %v4574_v0 }
  0xbf   : > { %4201 = vmatpush1.msk.msra.mxu0 %vm255_vm1, %v1481_v58  ;;  %v1484_v61 = vsel %vm1480_vm5, %v1467_v55, %v1469_v60  ;;  %4196 = vmatmul.mubr.msk.f32.vlgmr.msra.gmra.mrb[2].mxu1 %vm251_vm2, %v4184_v44  ;;  %v1485_v6 = vsel %vm1480_vm5, %v1469_v60, %v1471_v59  ;;  %v4244_v55 = vld [vmem:[%s5172_s1 + $0x30] sm:$0xff] }
  0xc0   : > { %4203 = vmatprep.subr.msk.mxu1 %vm255_vm1, %v1484_v61  ;;  %1575 = vmatprep.mubr.f32.mxu0 %v4574_v0 }
  0xc1   : > { %4204 = vmatpush1.msk.msra.mxu1 %vm255_vm1, %v1483_v63  ;;  %1646 = vmatprep.mubr.f32.mxu1 %v4574_v0 }
  0xc2   : > { %v1475_v1 = vpop.permute.xlu1 %1474  ;;  %v1473_v2 = vpop.permute.xlu0 %1472  ;;  %4202 = vmatmul.mubr.msk.f32.vlgmr.msra.gmra.mrb[0].mxu0 %vm251_vm2, %v4199_v62  ;;  %4488 = vset.pattern.permute.xlu0 %v4584_v3 }
  0xc3   : > { %v1486_v5 = vsel %vm1480_vm5, %v1471_v59, %v1473_v2  ;;  %4205 = vmatmul.mubr.msk.f32.vlgmr.msra.gmra.mrb[0].mxu1 %vm251_vm2, %v4199_v62  ;;  %1717 = vmatprep.mubr.f32.mxu0 %v4574_v0  ;;  %v1487_v10 = vsel %vm1480_vm5, %v1473_v2, %v1475_v1 }
  0xc4   : > { %4206 = vmatprep.subr.msk.mxu0 %vm255_vm1, %v1486_v5  ;;  %1788 = vmatprep.mubr.f32.mxu1 %v4574_v0 }
  0xc5   : > { %4207 = vmatpush1.msk.msra.mxu0 %vm255_vm1, %v1485_v6  ;;  %4032 = vperm.xlu0 %4488, %v4029_v4  }
  0xc6   : > { %v1894_v7 = vpop.permute.xlu1 %1893  ;;  %v1477_v8 = vpop.permute.xlu0 %1476  ;;  %4208 = vmatmul.mubr.msk.f32.vlgmr.msra.gmra.mrb[2].mxu0 %vm251_vm2, %v4199_v62 }
  0xc7   : > { %v1488_v9 = vsel %vm1480_vm5, %v1475_v1, %v1477_v8  ;;  %2006 = vmatprep.mubr.f32.mxu0 %v4574_v0 }
  0xc8   : > { %4209 = vmatprep.subr.msk.mxu1 %vm255_vm1, %v1488_v9 }
  0xc9   : > { %4210 = vmatpush1.msk.msra.mxu1 %vm255_vm1, %v1487_v10 }
  0xca   : > { %v1892_v11 = vpop.permute.xlu1 %1891  ;;  %v1896_v12 = vpop.permute.xlu0 %1895  ;;  %4325 = vmatprep.subr.mxu1 %v4574_v0  ;;  %4211 = vmatmul.mubr.msk.f32.vlgmr.msra.gmra.mrb[2].mxu1 %vm251_vm2, %v4199_v62 }
  0xcb   : > { %v1912_v13 = vsel %vm1911_vm6, %v1892_v11, %v1894_v7  ;;  %v1913_v14 = vsel %vm1911_vm6, %v1894_v7, %v1896_v12  ;;  %4327 = vmatprep.mubr.msk.f32.mxu1 %vm4582_vm3, %v4574_v0 }
  0xcc   : > { %4215 = vmatprep.subr.msk.mxu0 %vm255_vm1, %v1913_v14  ;;  %v4259_v14 = vld [vmem:[%s5172_s1 + $0x38] sm:$0xff] }
  0xcd   : > { %4216 = vmatpush1.msk.msra.mxu0 %vm255_vm1, %v1912_v13 }
  0xce   : > { %v1902_v16 = vpop.permute.xlu1 %1901  ;;  %v1479_v17 = vpop.permute.xlu0 %1478  ;;  %4217 = vmatmul.mubr.msk.f32.vlgmr.msra.gmra.mrb[0].mxu0 %vm251_vm2, %v4214_v15 }
  0xcf   : > { %v1489_v18 = vsel %vm1480_vm5, %v1477_v8, %v1479_v17  ;;  %2148 = vmatprep.mubr.f32.mxu0 %v4574_v0 }
  0xd0   : > { %4326 = vmatpush3.msk.msra.mxu1 %vm255_vm1, %v1489_v18 }
  0xd1   : > { %4328 = vmatmul.mubr.msk.f32.vlgmr.msra.gmra.mrb[6].mxu1 %vm251_vm2, %v4199_v62 }
  0xd2   : > { %v1898_v19 = vpop.permute.xlu1 %1897  ;;  %v1904_v20 = vpop.permute.xlu0 %1903  ;;  %2077 = vmatprep.mubr.f32.mxu1 %v4574_v0 }
  0xd3   : > { %v1917_v21 = vsel %vm1911_vm6, %v1902_v16, %v1904_v20  ;;  %v1914_v26 = vsel %vm1911_vm6, %v1896_v12, %v1898_v19 }
  0xd4   : > { %4221 = vmatprep.subr.msk.mxu0 %vm255_vm1, %v1917_v21 }
  0xd6   : > { %v1906_v22 = vpop.permute.xlu1 %1905  ;;  %v1900_v23 = vpop.permute.xlu0 %1899 }
  0xd7   : > { %v1915_v24 = vsel %vm1911_vm6, %v1898_v19, %v1900_v23  ;;  %v1916_v25 = vsel %vm1911_vm6, %v1900_v23, %v1902_v16  ;;  %v1918_v31 = vsel %vm1911_vm6, %v1904_v20, %v1906_v22 }
  0xd8   : > { %4218 = vmatprep.subr.msk.mxu1 %vm255_vm1, %v1915_v24  ;;  %4222 = vmatpush1.msk.msra.mxu0 %vm255_vm1, %v1916_v25 }
  0xd9   : > { %4219 = vmatpush1.msk.msra.mxu1 %vm255_vm1, %v1914_v26  ;;  %4330 = vmatprep.subr.mxu0 %v4574_v0 }
  0xda   : > { %v1910_v27 = vpop.permute.xlu1 %1909  ;;  %v1908_v28 = vpop.permute.xlu0 %1907  ;;  %4223 = vmatmul.mubr.msk.f32.vlgmr.msra.gmra.mrb[2].mxu0 %vm251_vm2, %v4214_v15  ;;  %4220 = vmatmul.mubr.msk.f32.vlgmr.msra.gmra.mrb[0].mxu1 %vm251_vm2, %v4214_v15 }
  0xdb   : > { %v1919_v29 = vsel %vm1911_vm6, %v1906_v22, %v1908_v28  ;;  %v1920_v30 = vsel %vm1911_vm6, %v1908_v28, %v1910_v27  ;;  %4332 = vmatprep.mubr.msk.f32.mxu0 %vm4582_vm3, %v4574_v0  ;;  %2219 = vmatprep.mubr.f32.mxu1 %v4574_v0 }
  0xdc   : > { %4224 = vmatprep.subr.msk.mxu1 %vm255_vm1, %v1919_v29  ;;  %4331 = vmatpush3.msk.msra.mxu0 %vm255_vm1, %v1920_v30 }
  0xdd   : > { %4225 = vmatpush1.msk.msra.mxu1 %vm255_vm1, %v1918_v31 }
  0xde   : > { %v2327_v32 = vpop.permute.xlu1 %2326  ;;  %v2325_v33 = vpop.permute.xlu0 %2324  ;;  %4333 = vmatmul.mubr.msk.f32.vlgmr.msra.gmra.mrb[8].mxu0 %vm251_vm2, %v4214_v15  ;;  %4226 = vmatmul.mubr.msk.f32.vlgmr.msra.gmra.mrb[2].mxu1 %vm251_vm2, %v4214_v15 }
  0xdf   : > { %v2344_v34 = vsel %vm2342_vm7, %v2325_v33, %v2327_v32  ;;  %2437 = vmatprep.mubr.f32.mxu0 %v4574_v0  ;;  %2508 = vmatprep.mubr.f32.mxu1 %v4574_v0 }
  0xe0   : > { %4230 = vmatprep.subr.msk.mxu0 %vm255_vm1, %v2344_v34 }
  0xe2   : > { %v2329_v35 = vpop.permute.xlu1 %2328  ;;  %v2323_v36 = vpop.permute.xlu0 %2322 }
  0xe3   : > { %v2343_v38 = vsel %vm2342_vm7, %v2323_v36, %v2325_v33  ;;  %v2345_v42 = vsel %vm2342_vm7, %v2327_v32, %v2329_v35  ;;  %v4274_v32 = vld [vmem:[%s5172_s1 + $0x40] sm:$0xff] }
  0xe4   : > { %4231 = vmatpush1.msk.msra.mxu0 %vm255_vm1, %v2343_v38 }
  0xe5   : > { %4232 = vmatmul.mubr.msk.f32.vlgmr.msra.gmra.mrb[0].mxu0 %vm251_vm2, %v4229_v37 }
  0xe6   : > { %v2333_v39 = vpop.permute.xlu1 %2332  ;;  %v2331_v40 = vpop.permute.xlu0 %2330  ;;  %2579 = vmatprep.mubr.f32.mxu0 %v4574_v0 }
  0xe7   : > { %v2346_v41 = vsel %vm2342_vm7, %v2329_v35, %v2331_v40  ;;  %v2347_v46 = vsel %vm2342_vm7, %v2331_v40, %v2333_v39 }
  0xe8   : > { %4233 = vmatprep.subr.msk.mxu1 %vm255_vm1, %v2346_v41 }
  0xe9   : > { %4234 = vmatpush1.msk.msra.mxu1 %vm255_vm1, %v2345_v42 }
  0xea   : > { %v2337_v43 = vpop.permute.xlu1 %2336  ;;  %v2335_v44 = vpop.permute.xlu0 %2334  ;;  %4235 = vmatmul.mubr.msk.f32.vlgmr.msra.gmra.mrb[0].mxu1 %vm251_vm2, %v4229_v37 }
  0xeb   : > { %v2348_v45 = vsel %vm2342_vm7, %v2333_v39, %v2335_v44  ;;  %2650 = vmatprep.mubr.f32.mxu1 %v4574_v0  ;;  %v2349_v50 = vsel %vm2342_vm7, %v2335_v44, %v2337_v43 }
  0xec   : > { %4236 = vmatprep.subr.msk.mxu0 %vm255_vm1, %v2348_v45 }
  0xed   : > { %4237 = vmatpush1.msk.msra.mxu0 %vm255_vm1, %v2347_v46 }
  0xee   : > { %v2756_v47 = vpop.permute.xlu1 %2755  ;;  %v2339_v48 = vpop.permute.xlu0 %2338  ;;  %4238 = vmatmul.mubr.msk.f32.vlgmr.msra.gmra.mrb[2].mxu0 %vm251_vm2, %v4229_v37 }
  0xef   : > { %v2350_v49 = vsel %vm2342_vm7, %v2337_v43, %v2339_v48  ;;  %2868 = vmatprep.mubr.f32.mxu0 %v4574_v0 }
  0xf0   : > { %4239 = vmatprep.subr.msk.mxu1 %vm255_vm1, %v2350_v49 }
  0xf1   : > { %4240 = vmatpush1.msk.msra.mxu1 %vm255_vm1, %v2349_v50 }
  0xf2   : > { %v2754_v51 = vpop.permute.xlu1 %2753  ;;  %v2758_v52 = vpop.permute.xlu0 %2757  ;;  %4241 = vmatmul.mubr.msk.f32.vlgmr.msra.gmra.mrb[2].mxu1 %vm251_vm2, %v4229_v37  ;;  %4335 = vmatprep.subr.mxu1 %v4574_v0 }
  0xf3   : > { %v2774_v53 = vsel %vm2773_vm8, %v2754_v51, %v2756_v47  ;;  %v2775_v54 = vsel %vm2773_vm8, %v2756_v47, %v2758_v52  ;;  %4337 = vmatprep.mubr.msk.f32.mxu1 %vm4582_vm3, %v4574_v0 }
  0xf4   : > { %4245 = vmatprep.subr.msk.mxu0 %vm255_vm1, %v2775_v54 }
  0xf5   : > { %4246 = vmatpush1.msk.msra.mxu0 %vm255_vm1, %v2774_v53 }
  0xf6   : > { %v2764_v56 = vpop.permute.xlu1 %2763  ;;  %v2341_v57 = vpop.permute.xlu0 %2340  ;;  %4247 = vmatmul.mubr.msk.f32.vlgmr.msra.gmra.mrb[0].mxu0 %vm251_vm2, %v4244_v55 }
  0xf7   : > { %v2351_v58 = vsel %vm2342_vm7, %v2339_v48, %v2341_v57  ;;  %3010 = vmatprep.mubr.f32.mxu0 %v4574_v0 }
  0xf8   : > { %4336 = vmatpush3.msk.msra.mxu1 %vm255_vm1, %v2351_v58 }
  0xf9   : > { %4338 = vmatmul.mubr.msk.f32.vlgmr.msra.gmra.mrb[8].mxu1 %vm251_vm2, %v4229_v37 }
  0xfa   : > { %v2760_v59 = vpop.permute.xlu1 %2759  ;;  %v2766_v60 = vpop.permute.xlu0 %2765  ;;  %2939 = vmatprep.mubr.f32.mxu1 %v4574_v0 }
  0xfb   : > { %v2779_v61 = vsel %vm2773_vm8, %v2764_v56, %v2766_v60  ;;  %v2776_v3 = vsel %vm2773_vm8, %v2758_v52, %v2760_v59 }
  0xfc   : > { %4251 = vmatprep.subr.msk.mxu0 %vm255_vm1, %v2779_v61 }
  0xfe   : > { %v2768_v62 = vpop.permute.xlu1 %2767  ;;  %v2762_v63 = vpop.permute.xlu0 %2761 }
  0xff   : > { %v2777_v1 = vsel %vm2773_vm8, %v2760_v59, %v2762_v63  ;;  %v2778_v2 = vsel %vm2773_vm8, %v2762_v63, %v2764_v56  ;;  %v2780_v8 = vsel %vm2773_vm8, %v2766_v60, %v2768_v62 }
 0x100   : > { %4248 = vmatprep.subr.msk.mxu1 %vm255_vm1, %v2777_v1  ;;  %4252 = vmatpush1.msk.msra.mxu0 %vm255_vm1, %v2778_v2 }
 0x101   : > { %4249 = vmatpush1.msk.msra.mxu1 %vm255_vm1, %v2776_v3  ;;  %4253 = vmatmul.mubr.msk.f32.vlgmr.msra.gmra.mrb[2].mxu0 %vm251_vm2, %v4244_v55 }
 0x102   : > { %v2772_v4 = vpop.permute.xlu1 %2771  ;;  %v2770_v5 = vpop.permute.xlu0 %2769  ;;  %4340 = vmatprep.subr.mxu0 %v4574_v0  ;;  %4342 = vmatprep.mubr.msk.f32.mxu0 %vm4582_vm3, %v4574_v0 }
 0x103   : > { %v2781_v6 = vsel %vm2773_vm8, %v2768_v62, %v2770_v5  ;;  %v2782_v7 = vsel %vm2773_vm8, %v2770_v5, %v2772_v4  ;;  %4250 = vmatmul.mubr.msk.f32.vlgmr.msra.gmra.mrb[0].mxu1 %vm251_vm2, %v4244_v55 }
 0x104   : > { %4254 = vmatprep.subr.msk.mxu1 %vm255_vm1, %v2781_v6  ;;  %4341 = vmatpush3.msk.msra.mxu0 %vm255_vm1, %v2782_v7 }
 0x105   : > { %4255 = vmatpush1.msk.msra.mxu1 %vm255_vm1, %v2780_v8  ;;  %4343 = vmatmul.mubr.msk.f32.vlgmr.msra.gmra.mrb[10].mxu0 %vm251_vm2, %v4244_v55 }
 0x106   : > { %v3189_v9 = vpop.permute.xlu1 %3188  ;;  %v3187_v10 = vpop.permute.xlu0 %3186  ;;  %3081 = vmatprep.mubr.f32.mxu1 %v4574_v0  ;;  %3299 = vmatprep.mubr.f32.mxu0 %v4574_v0 }
 0x107   : > { %v3206_v11 = vsel %vm3204_vm9, %v3187_v10, %v3189_v9  ;;  %4256 = vmatmul.mubr.msk.f32.vlgmr.msra.gmra.mrb[2].mxu1 %vm251_vm2, %v4244_v55 }
 0x108   : > { %4260 = vmatprep.subr.msk.mxu0 %vm255_vm1, %v3206_v11  ;;  %3370 = vmatprep.mubr.f32.mxu1 %v4574_v0 }
 0x10a   : > { %v3191_v12 = vpop.permute.xlu1 %3190  ;;  %v3185_v13 = vpop.permute.xlu0 %3184 }
 0x10b   : > { %v3205_v15 = vsel %vm3204_vm9, %v3185_v13, %v3187_v10  ;;  %v3207_v19 = vsel %vm3204_vm9, %v3189_v9, %v3191_v12 }
 0x10c   : > { %4261 = vmatpush1.msk.msra.mxu0 %vm255_vm1, %v3205_v15 }
 0x10d   : > { %4262 = vmatmul.mubr.msk.f32.vlgmr.msra.gmra.mrb[0].mxu0 %vm251_vm2, %v4259_v14 }
 0x10e   : > { %v3195_v16 = vpop.permute.xlu1 %3194  ;;  %v3193_v17 = vpop.permute.xlu0 %3192  ;;  %3441 = vmatprep.mubr.f32.mxu0 %v4574_v0 }
 0x10f   : > { %v3208_v18 = vsel %vm3204_vm9, %v3191_v12, %v3193_v17  ;;  %v3209_v23 = vsel %vm3204_vm9, %v3193_v17, %v3195_v16 }
 0x110   : > { %4263 = vmatprep.subr.msk.mxu1 %vm255_vm1, %v3208_v18 }
 0x111   : > { %4264 = vmatpush1.msk.msra.mxu1 %vm255_vm1, %v3207_v19 }
 0x112   : > { %v3199_v20 = vpop.permute.xlu1 %3198  ;;  %v3197_v21 = vpop.permute.xlu0 %3196  ;;  %4265 = vmatmul.mubr.msk.f32.vlgmr.msra.gmra.mrb[0].mxu1 %vm251_vm2, %v4259_v14 }
 0x113   : > { %v3210_v22 = vsel %vm3204_vm9, %v3195_v16, %v3197_v21  ;;  %3512 = vmatprep.mubr.f32.mxu1 %v4574_v0  ;;  %v3211_v27 = vsel %vm3204_vm9, %v3197_v21, %v3199_v20 }
 0x114   : > { %4266 = vmatprep.subr.msk.mxu0 %vm255_vm1, %v3210_v22 }
 0x115   : > { %4267 = vmatpush1.msk.msra.mxu0 %vm255_vm1, %v3209_v23 }
 0x116   : > { %v3618_v24 = vpop.permute.xlu1 %3617  ;;  %4268 = vmatmul.mubr.msk.f32.vlgmr.msra.gmra.mrb[2].mxu0 %vm251_vm2, %v4259_v14 }
 0x117   : > { %v3201_v25 = vpop.permute.xlu0 %3200  ;;  %3730 = vmatprep.mubr.f32.mxu0 %v4574_v0 }
 0x118   : > { %v3212_v26 = vsel %vm3204_vm9, %v3199_v20, %v3201_v25 }
 0x119   : > { %4269 = vmatprep.subr.msk.mxu1 %vm255_vm1, %v3212_v26 }
 0x11a   : > { %4270 = vmatpush1.msk.msra.mxu1 %vm255_vm1, %v3211_v27 }
 0x11b   : > { %v3616_v28 = vpop.permute.xlu1 %3615  ;;  %4271 = vmatmul.mubr.msk.f32.vlgmr.msra.gmra.mrb[2].mxu1 %vm251_vm2, %v4259_v14  ;;  %4345 = vmatprep.subr.mxu1 %v4574_v0 }
 0x11c   : > { %v3636_v29 = vsel %vm3635_vm10, %v3616_v28, %v3618_v24  ;;  %v3620_v30 = vpop.permute.xlu0 %3619  ;;  %4347 = vmatprep.mubr.msk.f32.mxu1 %vm4582_vm3, %v4574_v0 }
 0x11d   : > { %v3637_v31 = vsel %vm3635_vm10, %v3618_v24, %v3620_v30 }
 0x11e   : > { %4275 = vmatprep.subr.msk.mxu0 %vm255_vm1, %v3637_v31 }
 0x11f   : > { %4276 = vmatpush1.msk.msra.mxu0 %vm255_vm1, %v3636_v29 }
 0x120   : > { %v3626_v33 = vpop.permute.xlu1 %3625  ;;  %4277 = vmatmul.mubr.msk.f32.vlgmr.msra.gmra.mrb[0].mxu0 %vm251_vm2, %v4274_v32 }
 0x121   : > { %v3203_v34 = vpop.permute.xlu0 %3202  ;;  %3872 = vmatprep.mubr.f32.mxu0 %v4574_v0 }
 0x122   : > { %v3213_v35 = vsel %vm3204_vm9, %v3201_v25, %v3203_v34 }
 0x123   : > { %4346 = vmatpush3.msk.msra.mxu1 %vm255_vm1, %v3213_v35 }
 0x124   : > { %4348 = vmatmul.mubr.msk.f32.vlgmr.msra.gmra.mrb[10].mxu1 %vm251_vm2, %v4259_v14 }
 0x125   : > { %v3622_v36 = vpop.permute.xlu1 %3621  ;;  %v3628_v37 = vpop.permute.xlu0 %3627  ;;  %3801 = vmatprep.mubr.f32.mxu1 %v4574_v0 }
 0x126   : > { %v3641_v38 = vsel %vm3635_vm10, %v3626_v33, %v3628_v37  ;;  %v3638_v43 = vsel %vm3635_vm10, %v3620_v30, %v3622_v36 }
 0x127   : > { %4281 = vmatprep.subr.msk.mxu0 %vm255_vm1, %v3641_v38 }
 0x12a   : > { %v3630_v39 = vpop.permute.xlu1 %3629  ;;  %v3624_v40 = vpop.permute.xlu0 %3623 }
 0x12b   : > { %v3639_v41 = vsel %vm3635_vm10, %v3622_v36, %v3624_v40  ;;  %v3640_v42 = vsel %vm3635_vm10, %v3624_v40, %v3626_v33  ;;  %v3642_v48 = vsel %vm3635_vm10, %v3628_v37, %v3630_v39 }
 0x12c   : > { %4278 = vmatprep.subr.msk.mxu1 %vm255_vm1, %v3639_v41  ;;  %4282 = vmatpush1.msk.msra.mxu0 %vm255_vm1, %v3640_v42 }
 0x12d   : > { %4279 = vmatpush1.msk.msra.mxu1 %vm255_vm1, %v3638_v43  ;;  %4283 = vmatmul.mubr.msk.f32.vlgmr.msra.gmra.mrb[2].mxu0 %vm251_vm2, %v4274_v32 }
 0x12e   : > { %v3634_v44 = vpop.permute.xlu1 %3633  ;;  %4280 = vmatmul.mubr.msk.f32.vlgmr.msra.gmra.mrb[0].mxu1 %vm251_vm2, %v4274_v32  ;;  %4350 = vmatprep.subr.mxu0 %v4574_v0 }
 0x12f   : > { %v3632_v45 = vpop.permute.xlu0 %3631  ;;  %4352 = vmatprep.mubr.msk.f32.mxu0 %vm4582_vm3, %v4574_v0  ;;  %3943 = vmatprep.mubr.f32.mxu1 %v4574_v0 }
 0x130   : > { %v3643_v46 = vsel %vm3635_vm10, %v3630_v39, %v3632_v45  ;;  %v3644_v47 = vsel %vm3635_vm10, %v3632_v45, %v3634_v44 }
 0x131   : > { %4284 = vmatprep.subr.msk.mxu1 %vm255_vm1, %v3643_v46  ;;  %4351 = vmatpush3.msk.msra.mxu0 %vm255_vm1, %v3644_v47 }
 0x132   : > { %4285 = vmatpush1.msk.msra.mxu1 %vm255_vm1, %v3642_v48  ;;  %4353 = vmatmul.mubr.msk.f32.vlgmr.msra.gmra.mrb[12].mxu0 %vm251_vm2, %v4274_v32 }
 0x133   : > { %4286 = vmatmul.mubr.msk.f32.vlgmr.msra.gmra.mrb[2].mxu1 %vm251_vm2, %v4274_v32 }
 0x144   : > { %v4033_v5 = vpop.permute.xlu0 %4032 }
 0x176   : > { %v624_v49 = vpop.f32.mrb[4].mxu0 }
 0x177   : > { %v4314_v50 = vpop.f32.mrb[5].mxu0 }
 0x189   : > { %v1008_v51 = vpop.f32.mrb[4].mxu1 }
 0x18a   : > { %v1009_v0 = vadd.f32 %v1008_v51, %v624_v49  ;;  %v4319_v52 = vpop.f32.mrb[5].mxu1 }
 0x191   : > { %v1430_v53 = vpop.f32.mrb[6].mxu0 }
 0x192   : > { %v1442_v54 = vadd.f32 %v1430_v53, %v1009_v0  ;;  %v4324_v55 = vpop.f32.mrb[7].mxu0 }
 0x1a4   : > { %v1861_v56 = vpop.f32.mrb[6].mxu1 }
 0x1a5   : > { %v1873_v57 = vadd.f32 %v1861_v56, %v1442_v54  ;;  %v4329_v58 = vpop.f32.mrb[7].mxu1 }
 0x1b1   : > { %v2292_v59 = vpop.f32.mrb[8].mxu0 }
 0x1b2   : > { %v2304_v60 = vadd.f32 %v2292_v59, %v1873_v57  ;;  %v4334_v61 = vpop.f32.mrb[9].mxu0 }
 0x1cc   : > { %v2723_v62 = vpop.f32.mrb[8].mxu1 }
 0x1cd   : > { %v2735_v63 = vadd.f32 %v2723_v62, %v2304_v60  ;;  %v4339_v1 = vpop.f32.mrb[9].mxu1 }
 0x1d8   : > { %v3154_v2 = vpop.f32.mrb[10].mxu0 }
 0x1d9   : > { %v3166_v3 = vadd.f32 %v3154_v2, %v2735_v63  ;;  %v4344_v4 = vpop.f32.mrb[11].mxu0 }
 0x1f3   : > { %v3732_v6 = vpop.f32.mrb[0].mxu0 }
 0x1f4   : > { %v4035_v7 = vadd.f32 %v4033_v5, %v3732_v6  ;;  %v3734_v8 = vpop.f32.mrb[1].mxu0 }
 0x1f5   : > { %v4036_v9 = vadd.f32 %v4033_v5, %v3734_v8 }
 0x1f6   : > { %4044 = vst [vmem:[%s5106_s27] sm:$0xff] %v4035_v7 }
 0x1f7   : > { %4045 = vst [vmem:[%s5106_s27 + $0x8] sm:$0xff] %v4036_v9  ;;  %v3585_v10 = vpop.f32.mrb[10].mxu1 }
 0x1f8   : > { %v3597_v11 = vadd.f32 %v3585_v10, %v3166_v3  ;;  %v4349_v12 = vpop.f32.mrb[11].mxu1 }
 0x200   : > { %v3874_v13 = vpop.f32.mrb[2].mxu0 }
 0x201   : > { %v4039_v14 = vadd.f32 %v4033_v5, %v3874_v13  ;;  %v3803_v15 = vpop.f32.mrb[0].mxu1  ;;  %v3876_v16 = vpop.f32.mrb[3].mxu0 }
 0x202   : > { %v4037_v17 = vadd.f32 %v4033_v5, %v3803_v15  ;;  %v4040_v18 = vadd.f32 %v4033_v5, %v3876_v16  ;;  %v3805_v19 = vpop.f32.mrb[1].mxu1 }
 0x203   : > { %4048 = vst [vmem:[%s5106_s27 + $0x20] sm:$0xff] %v4039_v14  ;;  %v4038_v20 = vadd.f32 %v4033_v5, %v3805_v19 }
 0x204   : > { %4046 = vst [vmem:[%s5106_s27 + $0x10] sm:$0xff] %v4037_v17  ;;  %4049 = vst [vmem:[%s5106_s27 + $0x28] sm:$0xff] %v4040_v18 }
 0x205   : > { %4047 = vst [vmem:[%s5106_s27 + $0x18] sm:$0xff] %v4038_v20  ;;  %v4016_v21 = vpop.f32.mrb[12].mxu0 }
 0x206   : > { %v4028_v22 = vadd.f32 %v4016_v21, %v3597_v11  ;;  %v3945_v23 = vpop.f32.mrb[2].mxu1  ;;  %v4354_v24 = vpop.f32.mrb[13].mxu0 }
 0x207   : > { %v4041_v25 = vadd.f32 %v4033_v5, %v3945_v23  ;;  %v3947_v26 = vpop.f32.mrb[3].mxu1 }
 0x208   : > { %v4043_v27 = vadd.f32 %v4033_v5, %v4028_v22  ;;  %v4042_v28 = vadd.f32 %v4033_v5, %v3947_v26 }
 0x209   : > { %4050 = vst [vmem:[%s5106_s27 + $0x30] sm:$0xff] %v4041_v25 }
 0x20a   : > { %4052 = vst [vmem:[%s5106_s27 + $0x40] sm:$0xff] %v4043_v27  ;;  %4051 = vst [vmem:[%s5106_s27 + $0x38] sm:$0xff] %v4042_v28 }
 0x20b   : > { %4507 = shalt.err (!%p4504_p5)
}
 0x20c   : > { %s4508_s10 = scalar_lea.hbm %s5119_s5, 1152  ;;  %s4512_s19 = scalar_lea.hbm %s5174_s3, 2304 }
 0x20d   : > { %p4509_p6 = scmp.ne.s32.totalorder %s5119_s5, %s4508_s10  ;;  %p4513_p10 = scmp.lt.u32.totalorder %s5119_s5, %s5174_s3 }
 0x20e   : > { %p4514_p11 = scmp.lt.u32.totalorder %s4512_s19, %s4508_s10  ;;  %p4516_p13 = scmp.lt.u32.totalorder %s4508_s10, %s5119_s5 }
 0x20f   : > { %p4510_p7 = pnand %p4509_p6, %p4646_p4 }
 0x210   : > { %p4515_p12 = por %p4514_p11, %p4513_p10 }
 0x211   : > { %p4511_p9 = pneg %p4510_p7 }
 0x212   : > { %p4517_p0 = por %p4516_p13, %p4515_p12 }
 0x214   : > { %p4518_p1 = pnand %p4517_p0, %p4511_p9 }
 0x216   : > { %4521 = shalt.err (!%p4518_p1)
}
 0x217   : > { %4422 = dma.vmem_to_hbm [thread:$0]  (%p4646_p4), %s5121_s29, 1152, %s5119_s5, %s4054_s15  }
 0x218 PF: > { %p4428_p2 = scmp.ge.s32.totalorder %s4572_s17, 2  ;;  %s4082_s26 = sand.u32 1, %s4552_s12  }
 0x219   : > { %s4083_s27 = scalar_lea.sflag [#allocation3], %s4082_s26 }
 0x21a   : > { %p4425_p3 = pnand %p4428_p2, %p4653_p8 }
 0x21c   : > { %4547 = dma.done.wait (!%p4425_p3), %s4083_s27, 1152  }
 0x21d   : > { %4549 = vsyncadd (!%p4425_p3), %s4083_s27, 4294966144  ;;  %s16_s17 = sadd.s32 1, %s4572_s17   ;;  %s5177_s12 = smov %s4556_s13 }
 0x21e   : > { %p13_p5 = scmp.ge.s32.totalorder %s16_s17, 4   ;;  %s5178_s13 = smov %s4560_s14 }
 0x21f   : > { %s5179_s14 = smov %s4659_s25  ;;  %s5180_s15 = smov %s4568_s16 }
 0x220   : > { %s5181_s16 = smov %s5183_s20  ;;  %15 = sbr.rel (!%p13_p5) target bundleno = 4 (0x4), region = 75 }
 0x227   :  { %4088 = vsyncpa [#allocation3], 1 }
 0x228   :  { %4090 = vsyncpa [#allocation3 + $0x1], 1 }

</bundles_post_ra>
